<compile_context>
chip_gen: v6e
topology: v6e:2x2x1
jax: 0.10.0
libtpu: 0.0.40
codegen_flags: <defaults>
</compile_context>

<pallas_src>
import functools

import jax
import jax.numpy as jnp
from jax.experimental import pallas as pl
from jax.experimental.pallas import tpu as pltpu

_LANE = 128


def _mlp_kernel(x_ref,
                w1_ref, c1_ref,
                w2_ref, c2_ref,
                w3_ref, c3_ref,
                o_ref):
    # Cast x to bf16 in-kernel (VPU, hidden under the pipeline) instead of a
    # separate wrapper-side XLA cast pass over HBM.
    x = x_ref[...].astype(jnp.bfloat16)

    # ----- fc1 + folded bn1 + relu (bf16 MXU, f32 accumulate/epilogue) -----
    h = jnp.dot(x, w1_ref[...], preferred_element_type=jnp.float32)
    h = jnp.maximum(h + c1_ref[...], 0.0)
    # dropout1: identity in eval mode.
    # TODO(synk): training-mode dropout would use pltpu.prng_seed / prng_random_bits.

    # ----- fc2 + folded bn2 + relu -----------------------------------------
    # h is re-cast to bf16 for the MXU; keep it f32 here if tighter accuracy
    # than the bf16-weight error budget is ever needed.
    h = jnp.dot(h.astype(jnp.bfloat16), w2_ref[...],
                preferred_element_type=jnp.float32)
    h = jnp.maximum(h + c2_ref[...], 0.0)
    # dropout2: identity in eval mode.

    # ----- fc3 (lane-dense, 128-padded output) ------------------------------
    out = jnp.dot(h.astype(jnp.bfloat16), w3_ref[...],
                  preferred_element_type=jnp.float32)
    o_ref[...] = (out + c3_ref[...]).astype(o_ref.dtype)


def _round_up(n: int, m: int) -> int:
    return ((n + m - 1) // m) * m


def _pick_block_b(B: int) -> int:
    # Target ~2 grid steps: an even split feeds both of v7x's TensorCores via
    # dimension_semantics=("parallel",), and on single-TC v5e/v6e the second
    # step only costs ~0.35 us of fixed overhead vs. one big step.  Cap at 512
    # rows/step (VMEM budget for the three f32 activation slabs; M >= 256 per
    # step already fills the 256x256 MXU on v6e/v7x).
    half = (B + 1) // 2
    return min(max(_round_up(half, 8), 8), 512)


@functools.partial(jax.jit, static_argnames=("block_b",))
def more_complex_mlp_forward(x, params, block_b=None):
    """Fused forward pass. x: [B, D_in] float32."""
    (w1, b1, g1, be1, m1, v1,
     w2, b2, g2, be2, m2, v2,
     w3, b3) = params
    eps = 1e-5  # PyTorch BatchNorm1d default

    B, D_in = x.shape
    H1 = w1.shape[1]
    H2 = w2.shape[1]
    C = w3.shape[1]
    # Pad every feature (lane) dim to a multiple of 128 -> unmasked tiles/stores.
    H1p = _round_up(H1, _LANE)
    H2p = _round_up(H2, _LANE)
    Cp = _round_up(C, _LANE)

    # Fold BatchNorm (eval mode) into weights + merged biases (plain-JAX glue):
    #   (x@w + b - m) * g/sqrt(v+eps) + beta  ==  x @ (w*s) + ((b - m)*s + beta)
    # then zero-pad the lane dims. Zero columns/rows contribute exactly zero
    # through bias + ReLU, so padding never changes the first C output columns.
    s1 = g1 * jax.lax.rsqrt(v1 + eps)
    s2 = g2 * jax.lax.rsqrt(v2 + eps)
    w1f = jnp.pad((w1 * s1[None, :]).astype(jnp.bfloat16),
                  ((0, 0), (0, H1p - H1)))                       # [D_in, H1p]
    w2f = jnp.pad((w2 * s2[None, :]).astype(jnp.bfloat16),
                  ((0, H1p - H1), (0, H2p - H2)))                # [H1p, H2p]
    w3f = jnp.pad(w3.astype(jnp.bfloat16),
                  ((0, H2p - H2), (0, Cp - C)))                  # [H2p, Cp]
    c1 = jnp.pad(((b1 - m1) * s1 + be1).astype(jnp.float32),
                 (0, H1p - H1))[None, :]                         # [1, H1p]
    c2 = jnp.pad(((b2 - m2) * s2 + be2).astype(jnp.float32),
                 (0, H2p - H2))[None, :]                         # [1, H2p]
    c3 = jnp.pad(b3.astype(jnp.float32), (0, Cp - C))[None, :]   # [1, Cp]

    if block_b is None:
        block_b = _pick_block_b(B)
    n_steps = -(-B // block_b)
    if n_steps > 1 and n_steps % 2:
        n_steps += 1  # even step count -> balanced split across v7x's 2 TCs
    Bp = n_steps * block_b

    # x stays f32 (cast happens inside the kernel); pad the batch only if ragged.
    xp = x if Bp == B else jnp.pad(x, ((0, Bp - B), (0, 0)))

    # Constant index_map -> weights/biases stay VMEM-resident across grid steps.
    # TODO(synk): for hidden sizes in the thousands, add pipeline_mode=pl.Buffered(1)
    # on these specs and/or a K-tiled reduction grid to fit v7x's 64 MiB VMEM.
    const = lambda shape: pl.BlockSpec(shape, lambda i: (0, 0))

    grid_spec = pltpu.PrefetchScalarGridSpec(
        num_scalar_prefetch=0,
        grid=(n_steps,),
        in_specs=[
            pl.BlockSpec((block_b, D_in), lambda i: (i, 0)),  # x tile over batch
            const((D_in, H1p)), const((1, H1p)),
            const((H1p, H2p)), const((1, H2p)),
            const((H2p, Cp)), const((1, Cp)),
        ],
        out_specs=pl.BlockSpec((block_b, Cp), lambda i: (i, 0)),
    )

    out = pl.pallas_call(
        _mlp_kernel,
        out_shape=jax.ShapeDtypeStruct((Bp, Cp), jnp.float32),
        grid_spec=grid_spec,
        compiler_params=pltpu.CompilerParams(
            dimension_semantics=("parallel",),
            # 32 MiB scoped VMEM is safe on every generation (v7x has only
            # 64 MiB physical); raise toward ~64-100 MiB on v5e/v6e only if
            # block_b / hidden sizes grow.
            vmem_limit_bytes=32 * 1024 * 1024,
        ),
    )(xp, w1f, c1, w2f, c2, w3f, c3)

    # Drop batch padding and the lane padding of num_classes.
    return out[:B, :C]


def _reference_forward(x, params):
    (w1, b1, g1, be1, m1, v1,
     w2, b2, g2, be2, m2, v2,
     w3, b3) = params
    eps = 1e-5
    h = x @ w1 + b1
    h = (h - m1) / jnp.sqrt(v1 + eps) * g1 + be1
    h = jnp.maximum(h, 0.0)
    h = h @ w2 + b2
    h = (h - m2) / jnp.sqrt(v2 + eps) * g2 + be2
    h = jnp.maximum(h, 0.0)
    return h @ w3 + b3


def init_params(key, input_size, hidden1, hidden2, num_classes):
    ks = jax.random.split(key, 8)

    def linear(kw, kb, fan_in, fan_out):
        # Same scheme as torch nn.Linear default: U(-1/sqrt(fan_in), 1/sqrt(fan_in)).
        bound = 1.0 / jnp.sqrt(fan_in)
        w = jax.random.uniform(kw, (fan_in, fan_out), jnp.float32, -bound, bound)
        b = jax.random.uniform(kb, (fan_out,), jnp.float32, -bound, bound)
        return w, b

    w1, b1 = linear(ks[0], ks[1], input_size, hidden1)
    w2, b2 = linear(ks[2], ks[3], hidden1, hidden2)
    w3, b3 = linear(ks[4], ks[5], hidden2, num_classes)

    # BatchNorm1d params perturbed deterministically so the BN path does something.
    g1 = 1.0 + 0.1 * jax.random.normal(ks[6], (hidden1,), jnp.float32)
    be1 = 0.05 * jnp.arange(hidden1, dtype=jnp.float32) / hidden1
    m1 = 0.02 * jnp.sin(jnp.arange(hidden1, dtype=jnp.float32))
    v1 = 1.0 + 0.05 * jnp.cos(jnp.arange(hidden1, dtype=jnp.float32)) ** 2

    g2 = 1.0 + 0.1 * jax.random.normal(ks[7], (hidden2,), jnp.float32)
    be2 = -0.03 * jnp.arange(hidden2, dtype=jnp.float32) / hidden2
    m2 = 0.01 * jnp.cos(jnp.arange(hidden2, dtype=jnp.float32))
    v2 = 1.0 + 0.05 * jnp.sin(jnp.arange(hidden2, dtype=jnp.float32)) ** 2

    return (w1, b1, g1, be1, m1, v1,
            w2, b2, g2, be2, m2, v2,
            w3, b3)


if __name__ == "__main__":
    batch = 20          # deliberately not a multiple of 8 -> exercises padding path
    input_size = 32
    hidden1 = 64
    hidden2 = 48
    num_classes = 16

    key = jax.random.PRNGKey(0)
    kx, kp = jax.random.split(key)
    x = jax.random.normal(kx, (batch, input_size), jnp.float32)
    params = init_params(kp, input_size, hidden1, hidden2, num_classes)

    out = more_complex_mlp_forward(x, params)
    out = jax.block_until_ready(out)

    ref = _reference_forward(x, params)
    assert out.shape == (batch, num_classes)
    # bf16 MXU inputs -> looser tolerance vs the pure-f32 reference.
    assert jnp.allclose(out, ref, atol=5e-2, rtol=5e-2), "mismatch vs reference"

    print("KERNEL_OK")
</pallas_src>

<mosaic_0001>
module attributes {stable_mosaic.version = 11 : i64} {
  func.func @_mlp_kernel(%arg0: i32, %arg1: memref<16x32xf32, #tpu.memory_space<vmem>>, %arg2: memref<32x128xbf16, #tpu.memory_space<vmem>>, %arg3: memref<1x128xf32, #tpu.memory_space<vmem>>, %arg4: memref<128x128xbf16, #tpu.memory_space<vmem>>, %arg5: memref<1x128xf32, #tpu.memory_space<vmem>>, %arg6: memref<128x128xbf16, #tpu.memory_space<vmem>>, %arg7: memref<1x128xf32, #tpu.memory_space<vmem>>, %arg8: memref<16x128xf32, #tpu.memory_space<vmem>>) attributes {dimension_semantics = [#tpu.dimension_semantics<parallel>], iteration_bounds = array<i64: 2>, scalar_prefetch = 0 : i64, scratch_operands = 0 : i64, tpu.core_type = #tpu.core_type<tc>, window_params = [{transform_indices = @transform_0, window_bounds = array<i64: 16, 32>}, {pipeline_mode = #tpu.pipeline_mode<synchronous>, transform_indices = @transform_1, window_bounds = array<i64: 32, 128>}, {pipeline_mode = #tpu.pipeline_mode<synchronous>, transform_indices = @transform_2, window_bounds = array<i64: 1, 128>}, {pipeline_mode = #tpu.pipeline_mode<synchronous>, transform_indices = @transform_3, window_bounds = array<i64: 128, 128>}, {pipeline_mode = #tpu.pipeline_mode<synchronous>, transform_indices = @transform_4, window_bounds = array<i64: 1, 128>}, {pipeline_mode = #tpu.pipeline_mode<synchronous>, transform_indices = @transform_5, window_bounds = array<i64: 128, 128>}, {pipeline_mode = #tpu.pipeline_mode<synchronous>, transform_indices = @transform_6, window_bounds = array<i64: 1, 128>}, {transform_indices = @transform_7, window_bounds = array<i64: 16, 128>}]} {
    %c0 = arith.constant 0 : index
    %c0_0 = arith.constant 0 : index
    %0 = vector.load %arg1[%c0, %c0_0] : memref<16x32xf32, #tpu.memory_space<vmem>>, vector<16x32xf32>
    %1 = arith.truncf %0 : vector<16x32xf32> to vector<16x32xbf16>
    %c0_1 = arith.constant 0 : index
    %c0_2 = arith.constant 0 : index
    %2 = vector.load %arg2[%c0_1, %c0_2] : memref<32x128xbf16, #tpu.memory_space<vmem>>, vector<32x128xbf16>
    %cst = arith.constant dense<0.000000e+00> : vector<16x128xf32>
    %3 = tpu.matmul %1, %2, %cst {dimension_numbers = #tpu.dot_dimension_numbers<[1], [0], [0], [1], [0, 0, 1, 1], [], []>} : vector<16x32xbf16>, vector<32x128xbf16>, vector<16x128xf32> -> vector<16x128xf32>
    %c0_3 = arith.constant 0 : index
    %c0_4 = arith.constant 0 : index
    %4 = vector.load %arg3[%c0_3, %c0_4] : memref<1x128xf32, #tpu.memory_space<vmem>>, vector<1x128xf32>
    %5 = vector.broadcast %4 : vector<1x128xf32> to vector<16x128xf32>
    %6 = arith.addf %3, %5 : vector<16x128xf32>
    %cst_5 = arith.constant 0.000000e+00 : f32
    %7 = vector.broadcast %cst_5 : f32 to vector<16x128xf32>
    %8 = arith.maximumf %6, %7 : vector<16x128xf32>
    %9 = arith.truncf %8 : vector<16x128xf32> to vector<16x128xbf16>
    %c0_6 = arith.constant 0 : index
    %c0_7 = arith.constant 0 : index
    %10 = vector.load %arg4[%c0_6, %c0_7] : memref<128x128xbf16, #tpu.memory_space<vmem>>, vector<128x128xbf16>
    %cst_8 = arith.constant dense<0.000000e+00> : vector<16x128xf32>
    %11 = tpu.matmul %9, %10, %cst_8 {dimension_numbers = #tpu.dot_dimension_numbers<[1], [0], [0], [1], [0, 0, 1, 1], [], []>} : vector<16x128xbf16>, vector<128x128xbf16>, vector<16x128xf32> -> vector<16x128xf32>
    %c0_9 = arith.constant 0 : index
    %c0_10 = arith.constant 0 : index
    %12 = vector.load %arg5[%c0_9, %c0_10] : memref<1x128xf32, #tpu.memory_space<vmem>>, vector<1x128xf32>
    %13 = vector.broadcast %12 : vector<1x128xf32> to vector<16x128xf32>
    %14 = arith.addf %11, %13 : vector<16x128xf32>
    %cst_11 = arith.constant 0.000000e+00 : f32
    %15 = vector.broadcast %cst_11 : f32 to vector<16x128xf32>
    %16 = arith.maximumf %14, %15 : vector<16x128xf32>
    %17 = arith.truncf %16 : vector<16x128xf32> to vector<16x128xbf16>
    %c0_12 = arith.constant 0 : index
    %c0_13 = arith.constant 0 : index
    %18 = vector.load %arg6[%c0_12, %c0_13] : memref<128x128xbf16, #tpu.memory_space<vmem>>, vector<128x128xbf16>
    %cst_14 = arith.constant dense<0.000000e+00> : vector<16x128xf32>
    %19 = tpu.matmul %17, %18, %cst_14 {dimension_numbers = #tpu.dot_dimension_numbers<[1], [0], [0], [1], [0, 0, 1, 1], [], []>} : vector<16x128xbf16>, vector<128x128xbf16>, vector<16x128xf32> -> vector<16x128xf32>
    %c0_15 = arith.constant 0 : index
    %c0_16 = arith.constant 0 : index
    %20 = vector.load %arg7[%c0_15, %c0_16] : memref<1x128xf32, #tpu.memory_space<vmem>>, vector<1x128xf32>
    %21 = vector.broadcast %20 : vector<1x128xf32> to vector<16x128xf32>
    %22 = arith.addf %19, %21 : vector<16x128xf32>
    %c0_17 = arith.constant 0 : index
    %c0_18 = arith.constant 0 : index
    %23 = vector.load %arg8[%c0_17, %c0_18] : memref<16x128xf32, #tpu.memory_space<vmem>>, vector<16x128xf32>
    tpu.vector_store %arg8[%c0_17, %c0_18], %22 {strides = array<i32>} : memref<16x128xf32, #tpu.memory_space<vmem>>, vector<16x128xf32>,
    return
  }
  func.func @transform_0(%arg0: i32) -> (i32, i32) {
    %c0_i32 = arith.constant 0 : i32
    %c0_i32_0 = arith.constant 0 : i32
    return %arg0, %c0_i32 : i32, i32
  }
  func.func @transform_1(%arg0: i32) -> (i32, i32) {
    %c0_i32 = arith.constant 0 : i32
    %c0_i32_0 = arith.constant 0 : i32
    %c0_i32_1 = arith.constant 0 : i32
    return %c0_i32, %c0_i32_0 : i32, i32
  }
  func.func @transform_2(%arg0: i32) -> (i32, i32) {
    %c0_i32 = arith.constant 0 : i32
    %c0_i32_0 = arith.constant 0 : i32
    %c0_i32_1 = arith.constant 0 : i32
    return %c0_i32, %c0_i32_0 : i32, i32
  }
  func.func @transform_3(%arg0: i32) -> (i32, i32) {
    %c0_i32 = arith.constant 0 : i32
    %c0_i32_0 = arith.constant 0 : i32
    %c0_i32_1 = arith.constant 0 : i32
    return %c0_i32, %c0_i32_0 : i32, i32
  }
  func.func @transform_4(%arg0: i32) -> (i32, i32) {
    %c0_i32 = arith.constant 0 : i32
    %c0_i32_0 = arith.constant 0 : i32
    %c0_i32_1 = arith.constant 0 : i32
    return %c0_i32, %c0_i32_0 : i32, i32
  }
  func.func @transform_5(%arg0: i32) -> (i32, i32) {
    %c0_i32 = arith.constant 0 : i32
    %c0_i32_0 = arith.constant 0 : i32
    %c0_i32_1 = arith.constant 0 : i32
    return %c0_i32, %c0_i32_0 : i32, i32
  }
  func.func @transform_6(%arg0: i32) -> (i32, i32) {
    %c0_i32 = arith.constant 0 : i32
    %c0_i32_0 = arith.constant 0 : i32
    %c0_i32_1 = arith.constant 0 : i32
    return %c0_i32, %c0_i32_0 : i32, i32
  }
  func.func @transform_7(%arg0: i32) -> (i32, i32) {
    %c0_i32 = arith.constant 0 : i32
    %c0_i32_0 = arith.constant 0 : i32
    return %arg0, %c0_i32 : i32, i32
  }
}

</mosaic_0001>

<bundles_post_ra>
// kernel: more_complex_mlp_forward.1
= control target key start
LH: loop header
LB: loop body
LE: loop exit
PB: predicated region body
PF: predicated region fallthrough
CT: control target
= control target key end

     0   :  { %s822_s24 = smov 0   ;;  %s933_s0 = inlined_call_operand.vmem [shape: f32[32,32], index: 0, kind: input, shape index: {}]   ;;  %s934_s1 = inlined_call_operand.vmem [shape: bf16[32,128], index: 1, kind: input, shape index: {}]   ;;  %s935_s2 = inlined_call_operand.vmem [shape: f32[1,128], index: 2, kind: input, shape index: {}]   ;;  %s936_s3 = inlined_call_operand.vmem [shape: bf16[128,128], index: 3, kind: input, shape index: {}]   ;;  %s937_s4 = inlined_call_operand.vmem [shape: f32[1,128], index: 4, kind: input, shape index: {}]   ;;  %s938_s5 = inlined_call_operand.vmem [shape: bf16[128,128], index: 5, kind: input, shape index: {}]   ;;  %s939_s6 = inlined_call_operand.vmem [shape: f32[1,128], index: 6, kind: input, shape index: {}]   ;;  %s940_s7 = inlined_call_operand.vmem [shape: f32[32,128], index: 7, kind: output, shape index: {}]  }
   0x1 LB: > { %s642_s25 = sadd.s32 4294967295, %s778_s24   ;;  %p646_p0 = scmp.ge.s32.totalorder %s778_s24, 1  ;;  %s778_s24 = sphi %s822_s24, %s17_s24  }
   0x2   : > { %p238_p1 = scmp.lt.s32.totalorder %s778_s24, 3 }
   0x4   : > { %p239_p2 = pnand %p646_p0, %p238_p1 }
   0x5   : > { %s647_s30 = sshll.u32 (!%p239_p2), %s642_s25, 1 }
   0x6   : > { %242 = sbr.rel (%p239_p2) target bundleno = 626 (0x272), region = 48  ;;  %p271_p3 = scmp.lt.s32.totalorder (!%p239_p2), %s647_s30, 3 }
   0xb   : > { %v754_v0 = vld [vmem:[%s934_s1 + $0x8] sm:$0xff]   ;;  %v780_v1 = vmov 0.0   ;;  %v755_v2 = vld [vmem:[%s934_s1] sm:$0xff]   ;;  %vm781_vm0 = vmmov 0   ;;  %v756_v3 = vld [vmem:[%s936_s3 + $0x38] sm:$0xff]   ;;  %s942_s30 = smov (!%p271_p3, %s647_s30), 3 }
   0xc   : > { %696 = vmatprep.subr.bf16.mxu0 %v780_v1  ;;  %704 = vmatprep.subr.bf16.mxu1 %v780_v1  ;;  %v757_v4 = vld [vmem:[%s936_s3 + $0x30] sm:$0xff]   ;;  %s648_s12 = sshll.u32 %s942_s30, 3  ;;  %v758_v5 = vld [vmem:[%s936_s3 + $0x28] sm:$0xff]   ;;  %vm309_vm1 = vcmask 261120   ;;  %v759_v9 = vld [vmem:[%s936_s3 + $0x20] sm:$0xff]  }
   0xd   : > { %697 = vmatpush3.bf16.msra.mxu0 %v754_v0  ;;  %700 = vmatprep.mubr.msk.bf16.mxu0 %vm781_vm0, %v780_v1  ;;  %s274_s17 = scalar_lea.vmem %s933_s0, %s648_s12  ;;  %v760_v10 = vld [vmem:[%s936_s3 + $0x18] sm:$0xff]   ;;  %v761_v11 = vld [vmem:[%s936_s3 + $0x10] sm:$0xff]   ;;  %v762_v12 = vld [vmem:[%s936_s3 + $0x8] sm:$0xff]   ;;  %s280_s11 = scalar_lea.vmem %s940_s7, %s648_s12 }
   0xe   : > { %698 = vmatprep.subr.bf16.mxu0 %v780_v1  ;;  %720 = vmatprep.mubr.msk.bf16.mxu1 %vm781_vm0, %v780_v1  ;;  %v283_v6 = vld [vmem:[%s274_s17] sm:$0xff]  ;;  %v284_v7 = vld [vmem:[%s274_s17 + $0x8] sm:$0xff]  ;;  %v764_v14 = vld [vmem:[%s938_s5 + $0x38] sm:$0xff]  }
   0xf   : > { %705 = vmatpush3.bf16.msra.mxu1 %v756_v3  ;;  %v285_v8 = vpack.c.bf16 %v284_v7, %v283_v6  ;;  %v763_v13 = vld [vmem:[%s936_s3] sm:$0xff]   ;;  %v765_v15 = vld [vmem:[%s938_s5 + $0x30] sm:$0xff]   ;;  %v766_v16 = vld [vmem:[%s938_s5 + $0x28] sm:$0xff]  }
  0x10   : > { %706 = vmatprep.subr.bf16.mxu1 %v780_v1  ;;  %v767_v17 = vld [vmem:[%s938_s5 + $0x20] sm:$0xff]   ;;  %v768_v18 = vld [vmem:[%s938_s5 + $0x18] sm:$0xff]   ;;  %v769_v29 = vld [vmem:[%s938_s5 + $0x10] sm:$0xff]  }
  0x11   : > { %699 = vmatpush3.bf16.msra.mxu0 %v755_v2  ;;  %v651_v19 = vld [vmem:[%s935_s2] ss:$0 sm:$0xff]  ;;  %v770_v30 = vld [vmem:[%s938_s5 + $0x8] sm:$0xff]  }
  0x12   : > { %724 = vmatprep.subr.bf16.mxu0 %v780_v1  ;;  %v771_v31 = vld [vmem:[%s938_s5] sm:$0xff]  }
  0x13   : > { %707 = vmatpush3.bf16.msra.mxu1 %v757_v4  ;;  %v655_v32 = vld [vmem:[%s937_s4] ss:$0 sm:$0xff] }
  0x14   : > { %708 = vmatprep.subr.bf16.mxu1 %v780_v1  ;;  %701 = vmatmul.mubr.msk.bf16.vlgmr.msra.gmra.mxu0 %vm309_vm1, %v285_v8  ;;  %v664_v42 = vld [vmem:[%s939_s6] ss:$0 sm:$0xff] }
  0x15   : > { %740 = vmatprep.mubr.msk.bf16.mxu0 %vm781_vm0, %v780_v1  ;;  %725 = vmatpush3.bf16.msra.mxu0 %v764_v14 }
  0x16   : > { %726 = vmatprep.subr.bf16.mxu0 %v780_v1 }
  0x17   : > { %709 = vmatpush3.bf16.msra.mxu1 %v758_v5 }
  0x18   : > { %710 = vmatprep.subr.bf16.mxu1 %v780_v1 }
  0x19   : > { %727 = vmatpush3.bf16.msra.mxu0 %v765_v15 }
  0x1a   : > { %728 = vmatprep.subr.bf16.mxu0 %v780_v1 }
  0x1b   : > { %711 = vmatpush3.bf16.msra.mxu1 %v759_v9 }
  0x1c   : > { %712 = vmatprep.subr.bf16.mxu1 %v780_v1 }
  0x1d   : > { %729 = vmatpush3.bf16.msra.mxu0 %v766_v16 }
  0x1e   : > { %730 = vmatprep.subr.bf16.mxu0 %v780_v1 }
  0x1f   : > { %713 = vmatpush3.bf16.msra.mxu1 %v760_v10 }
  0x20   : > { %714 = vmatprep.subr.bf16.mxu1 %v780_v1 }
  0x21   : > { %731 = vmatpush3.bf16.msra.mxu0 %v767_v17 }
  0x22   : > { %732 = vmatprep.subr.bf16.mxu0 %v780_v1 }
  0x23   : > { %715 = vmatpush3.bf16.msra.mxu1 %v761_v11 }
  0x24   : > { %716 = vmatprep.subr.bf16.mxu1 %v780_v1 }
  0x25   : > { %733 = vmatpush3.bf16.msra.mxu0 %v768_v18 }
  0x26   : > { %734 = vmatprep.subr.bf16.mxu0 %v780_v1 }
  0x27   : > { %717 = vmatpush3.bf16.msra.mxu1 %v762_v12 }
  0x28   : > { %718 = vmatprep.subr.bf16.mxu1 %v780_v1 }
  0x29   : > { %735 = vmatpush3.bf16.msra.mxu0 %v769_v29 }
  0x2a   : > { %736 = vmatprep.subr.bf16.mxu0 %v780_v1 }
  0x2b   : > { %719 = vmatpush3.bf16.msra.mxu1 %v763_v13 }
  0x2d   : > { %737 = vmatpush3.bf16.msra.mxu0 %v770_v30 }
  0x2e   : > { %738 = vmatprep.subr.bf16.mxu0 %v780_v1 }
  0x31   : > { %739 = vmatpush3.bf16.msra.mxu0 %v771_v31 }
  0xd4   : > { %v347_v20 = vpop.f32.mrf.mxu0 }
  0xd5   : > { %v348_v22 = vadd.f32 %v651_v19, %v347_v20 }
  0xd6   : > { %v702_v21 = vpop.f32.mrf.mxu0 }
  0xd7   : > { %v354_v26 = vmax.f32 %v348_v22, 0.0 }
  0xd8   : > { %v350_v23 = vpop.f32.mrf.mxu0 }
  0xd9   : > { %v351_v24 = vadd.f32 %v651_v19, %v350_v23 }
  0xda   : > { %v703_v25 = vpop.f32.mrf.mxu0 }
  0xdb   : > { %v355_v27 = vmax.f32 %v351_v24, 0.0 }
  0xdd   : > { %v356_v28 = vpack.c.bf16 %v355_v27, %v354_v26 }
  0xdf   : > { %721 = vmatmul.mubr.bf16.vlgmr.msra.gmra.mxu1 %v356_v28 }
 0x19f   : > { %v462_v33 = vpop.f32.mrf.mxu1 }
 0x1a0   : > { %v463_v35 = vadd.f32 %v655_v32, %v462_v33 }
 0x1a1   : > { %v722_v34 = vpop.f32.mrf.mxu1 }
 0x1a2   : > { %v469_v39 = vmax.f32 %v463_v35, 0.0 }
 0x1a3   : > { %v465_v36 = vpop.f32.mrf.mxu1 }
 0x1a4   : > { %v466_v37 = vadd.f32 %v655_v32, %v465_v36 }
 0x1a5   : > { %v723_v38 = vpop.f32.mrf.mxu1 }
 0x1a6   : > { %v470_v40 = vmax.f32 %v466_v37, 0.0 }
 0x1a8   : > { %v471_v41 = vpack.c.bf16 %v470_v40, %v469_v39 }
 0x1aa   : > { %741 = vmatmul.mubr.bf16.vlgmr.msra.gmra.mxu0 %v471_v41 }
 0x26a   : > { %v577_v43 = vpop.f32.mrf.mxu0 }
 0x26b   : > { %v578_v44 = vadd.f32 %v664_v42, %v577_v43 }
 0x26c   : > { %v742_v45 = vpop.f32.mrf.mxu0 }
 0x26d   : > { %584 = vst [vmem:[%s280_s11] sm:$0xff] %v578_v44 }
 0x26e   : > { %v580_v46 = vpop.f32.mrf.mxu0 }
 0x26f   : > { %v581_v47 = vadd.f32 %v664_v42, %v580_v46 }
 0x270   : > { %v743_v48 = vpop.f32.mrf.mxu0 }
 0x271   : > { %585 = vst [vmem:[%s280_s11 + $0x8] sm:$0xff] %v581_v47 }
 0x272 PF: > { %s17_s24 = sadd.s32 1, %s778_s24  }
 0x273   : > { %p14_p4 = scmp.ge.s32.totalorder %s17_s24, 4  }
 0x275   :  { %16 = sbr.rel (!%p14_p4) target bundleno = 1 (0x1), region = 78 }

</bundles_post_ra>
